<compile_context>
chip_gen: v7x
topology: tpu7x:2x2x1
jax: 0.10.0
libtpu: 0.0.40
codegen_flags: <defaults>
</compile_context>

<pallas_src>
import functools

import jax
import jax.numpy as jnp
from jax.experimental import pallas as pl
from jax.experimental.pallas import tpu as pltpu


# -----------------------------------------------------------------------------
# Kernel 1: global branch
#   spatial mean (accumulated over row tiles) -> 1x1 -> BN -> ReLU -> 1x1 -> BN
# -----------------------------------------------------------------------------
def _global_att_kernel(inv_hw, x_ref, w1_ref, s1_ref, b1_ref,
                       w2_ref, s2_ref, b2_ref, xg_ref, acc_ref):
    i = pl.program_id(1)

    @pl.when(i == 0)
    def _init():
        acc_ref[...] = jnp.zeros_like(acc_ref)

    # Accumulate the spatial sum for this row tile (f32 accumulator).
    acc_ref[...] += jnp.sum(x_ref[0], axis=0, keepdims=True)        # (1, C)

    @pl.when(i == pl.num_programs(1) - 1)
    def _finalize():
        avg = acc_ref[...] * inv_hw                                  # (1, C) f32
        h = jnp.dot(avg.astype(jnp.bfloat16), w1_ref[...],
                    preferred_element_type=jnp.float32)              # (1, Cr)
        h = jnp.maximum(h * s1_ref[...] + b1_ref[...], 0.0)          # BN + ReLU
        g = jnp.dot(h.astype(jnp.bfloat16), w2_ref[...],
                    preferred_element_type=jnp.float32)              # (1, C)
        xg_ref[0] = g * s2_ref[...] + b2_ref[...]                    # BN


# -----------------------------------------------------------------------------
# Kernel 2: local branch + fusion
#   per row tile: 1x1 -> BN -> ReLU -> 1x1 -> BN -> (+ xg) -> sigmoid
# -----------------------------------------------------------------------------
def _msca_main_kernel(x_ref, xg_ref, w1_ref, s1_ref, b1_ref,
                      w2_ref, s2_ref, b2_ref, o_ref):
    x = x_ref[0].astype(jnp.bfloat16)                                # (tm, C)
    h = jnp.dot(x, w1_ref[...], preferred_element_type=jnp.float32)  # (tm, Cr)
    h = jnp.maximum(h * s1_ref[...] + b1_ref[...], 0.0)              # BN + ReLU
    xl = jnp.dot(h.astype(jnp.bfloat16), w2_ref[...],
                 preferred_element_type=jnp.float32)                 # (tm, C)
    xl = xl * s2_ref[...] + b2_ref[...]                              # BN
    y = xl + xg_ref[0]                                               # broadcast (1,C)
    o_ref[0] = 1.0 / (1.0 + jnp.exp(-y))                             # sigmoid (EUP exp)


# -----------------------------------------------------------------------------
# Wrapper
# -----------------------------------------------------------------------------
def _pick_row_tile(hw, max_tile=512):
    """Largest multiple-of-8 divisor of hw that is <= max_tile (else hw itself)."""
    if hw <= max_tile:
        return hw
    for t in range(max_tile - max_tile % 8, 7, -8):
        if hw % t == 0:
            return t
    return hw  # fallback: single resident block (still legal: equals full dim)


def msca_forward_nchw(x_nchw, P, *, max_row_tile=512):
    """MSCA forward.  x_nchw: (B, C, H, W) float32 -> (B, C, H, W) float32."""
    B, C, H, W = x_nchw.shape
    HW = H * W
    Cr = P["l_w1"].shape[1]

    # Layout glue: NCHW -> (B, HW, C) so channels sit on the lane axis.
    x = jnp.transpose(x_nchw, (0, 2, 3, 1)).reshape(B, HW, C).astype(jnp.float32)

    tm = _pick_row_tile(HW, max_row_tile)
    n_tiles = HW // tm

    row_spec = pl.BlockSpec((1, tm, C), lambda b, i: (b, i, 0))
    w1_spec = pl.BlockSpec((C, Cr), lambda b, i: (0, 0))
    w2_spec = pl.BlockSpec((Cr, C), lambda b, i: (0, 0))
    a1_spec = pl.BlockSpec((1, Cr), lambda b, i: (0, 0))
    a2_spec = pl.BlockSpec((1, C), lambda b, i: (0, 0))
    xg_spec = pl.BlockSpec((1, 1, C), lambda b, i: (b, 0, 0))

    # ---- global branch (pooled MLP), one launch --------------------------------
    xg = pl.pallas_call(
        functools.partial(_global_att_kernel, 1.0 / HW),
        grid=(B, n_tiles),
        in_specs=[row_spec, w1_spec, a1_spec, a1_spec, w2_spec, a2_spec, a2_spec],
        out_specs=xg_spec,
        out_shape=jax.ShapeDtypeStruct((B, 1, C), jnp.float32),
        scratch_shapes=[pltpu.VMEM((1, C), jnp.float32)],
        compiler_params=pltpu.CompilerParams(
            dimension_semantics=("parallel", "arbitrary")),
    )(x, P["g_w1"], P["g_s1"], P["g_b1"], P["g_w2"], P["g_s2"], P["g_b2"])

    # ---- local branch + add global + sigmoid, one launch ------------------------
    out = pl.pallas_call(
        _msca_main_kernel,
        grid=(B, n_tiles),
        in_specs=[row_spec, xg_spec,
                  w1_spec, a1_spec, a1_spec, w2_spec, a2_spec, a2_spec],
        out_specs=row_spec,
        out_shape=jax.ShapeDtypeStruct((B, HW, C), jnp.float32),
        compiler_params=pltpu.CompilerParams(
            dimension_semantics=("parallel", "parallel")),
    )(x, xg, P["l_w1"], P["l_s1"], P["l_b1"], P["l_w2"], P["l_s2"], P["l_b2"])

    return jnp.transpose(out.reshape(B, H, W, C), (0, 3, 1, 2))


# -----------------------------------------------------------------------------
# Deterministic parameter init (synthetic weights; BN folded in inference mode)
# -----------------------------------------------------------------------------
def init_msca_params(channels=128, r=4, seed=0):
    Cr = channels // r
    keys = iter(jax.random.split(jax.random.PRNGKey(seed), 32))

    def nrm(shape, s=0.1):
        return (s * jax.random.normal(next(keys), shape)).astype(jnp.float32)

    def fold_bn(c, conv_bias):
        gamma = 1.0 + 0.1 * jax.random.normal(next(keys), (c,))
        beta = 0.1 * jax.random.normal(next(keys), (c,))
        mean = 0.1 * jax.random.normal(next(keys), (c,))
        var = 1.0 + 0.5 * jax.random.uniform(next(keys), (c,))
        s = gamma * jax.lax.rsqrt(var + 1e-5)
        shift = beta + s * (conv_bias - mean)     # conv bias folded into BN shift
        return (s.reshape(1, c).astype(jnp.float32),
                shift.reshape(1, c).astype(jnp.float32))

    P = {}
    for pre in ("l", "g"):                         # local / global branch
        w1, b1c = nrm((channels, Cr)), nrm((Cr,))
        s1, sh1 = fold_bn(Cr, b1c)
        w2, b2c = nrm((Cr, channels)), nrm((channels,))
        s2, sh2 = fold_bn(channels, b2c)
        P[f"{pre}_w1"] = w1.astype(jnp.bfloat16)   # MXU operands in bf16
        P[f"{pre}_w2"] = w2.astype(jnp.bfloat16)
        P[f"{pre}_s1"], P[f"{pre}_b1"] = s1, sh1   # affine epilogue in f32
        P[f"{pre}_s2"], P[f"{pre}_b2"] = s2, sh2
    return P


# -----------------------------------------------------------------------------
# Plain-JAX reference (same folded params) for a numerical sanity check
# -----------------------------------------------------------------------------
def msca_reference(x_nchw, P):
    x = jnp.transpose(x_nchw, (0, 2, 3, 1)).astype(jnp.float32)     # (B,H,W,C)

    def branch(z, pre):
        w1 = P[f"{pre}_w1"].astype(jnp.float32)
        w2 = P[f"{pre}_w2"].astype(jnp.float32)
        h = jnp.maximum((z @ w1) * P[f"{pre}_s1"] + P[f"{pre}_b1"], 0.0)
        return (h @ w2) * P[f"{pre}_s2"] + P[f"{pre}_b2"]

    xl = branch(x, "l")                                             # (B,H,W,C)
    xg = branch(jnp.mean(x, axis=(1, 2)), "g")[:, None, None, :]    # (B,1,1,C)
    wei = jax.nn.sigmoid(xl + xg)
    return jnp.transpose(wei, (0, 3, 1, 2))


# -----------------------------------------------------------------------------
# Demo
# -----------------------------------------------------------------------------
if __name__ == "__main__":
    B, C, r = 2, 128, 4          # MSCA defaults: channels=128, r=4
    H = W = 16

    kx, _ = jax.random.split(jax.random.PRNGKey(0))
    x = jax.random.normal(kx, (B, C, H, W), jnp.float32)
    params = init_msca_params(C, r, seed=0)

    out = jax.block_until_ready(msca_forward_nchw(x, params))
    ref = jax.block_until_ready(msca_reference(x, params))

    assert out.shape == (B, C, H, W), out.shape
    assert bool(jnp.all(jnp.isfinite(out)))
    max_err = float(jnp.max(jnp.abs(out - ref)))
    assert max_err < 5e-2, f"max abs err vs reference: {max_err}"
    print("KERNEL_OK")
</pallas_src>

<mosaic_0001>
module attributes {stable_mosaic.version = 11 : i64} {
  func.func @_global_att_kernel(%arg0: i32, %arg1: i32, %arg2: memref<1x256x128xf32, #tpu.memory_space<vmem>>, %arg3: memref<128x32xbf16, #tpu.memory_space<vmem>>, %arg4: memref<1x32xf32, #tpu.memory_space<vmem>>, %arg5: memref<1x32xf32, #tpu.memory_space<vmem>>, %arg6: memref<32x128xbf16, #tpu.memory_space<vmem>>, %arg7: memref<1x128xf32, #tpu.memory_space<vmem>>, %arg8: memref<1x128xf32, #tpu.memory_space<vmem>>, %arg9: memref<1x1x128xf32, #tpu.memory_space<vmem>>, %arg10: memref<1x128xf32, #tpu.memory_space<vmem>>) attributes {dimension_semantics = [#tpu.dimension_semantics<parallel>, #tpu.dimension_semantics<arbitrary>], iteration_bounds = array<i64: 2, 1>, scalar_prefetch = 0 : i64, scratch_operands = 1 : i64, tpu.core_type = #tpu.core_type<tc>, window_params = [{transform_indices = @transform_0, window_bounds = array<i64: 1, 256, 128>}, {pipeline_mode = #tpu.pipeline_mode<synchronous>, transform_indices = @transform_1, window_bounds = array<i64: 128, 32>}, {pipeline_mode = #tpu.pipeline_mode<synchronous>, transform_indices = @transform_2, window_bounds = array<i64: 1, 32>}, {pipeline_mode = #tpu.pipeline_mode<synchronous>, transform_indices = @transform_3, window_bounds = array<i64: 1, 32>}, {pipeline_mode = #tpu.pipeline_mode<synchronous>, transform_indices = @transform_4, window_bounds = array<i64: 32, 128>}, {pipeline_mode = #tpu.pipeline_mode<synchronous>, transform_indices = @transform_5, window_bounds = array<i64: 1, 128>}, {pipeline_mode = #tpu.pipeline_mode<synchronous>, transform_indices = @transform_6, window_bounds = array<i64: 1, 128>}, {transform_indices = @transform_7, window_bounds = array<i64: 1, 1, 128>}]} {
    %c0_i32 = arith.constant 0 : i32
    %0 = arith.cmpi eq, %arg1, %c0_i32 : i32
    %1 = arith.extui %0 : i1 to i32
    %c0_i32_0 = arith.constant 0 : i32
    %2 = arith.cmpi ne, %1, %c0_i32_0 : i32
    scf.if %2 {
      %cst_9 = arith.constant 0.000000e+00 : f32
      %13 = vector.broadcast %cst_9 : f32 to vector<1x128xf32>
      %c0_10 = arith.constant 0 : index
      %c0_11 = arith.constant 0 : index
      %14 = vector.load %arg10[%c0_10, %c0_11] : memref<1x128xf32, #tpu.memory_space<vmem>>, vector<1x128xf32>
      tpu.vector_store %arg10[%c0_10, %c0_11], %13 {strides = array<i32>} : memref<1x128xf32, #tpu.memory_space<vmem>>, vector<1x128xf32>,
    } else {
    }
    %c0 = arith.constant 0 : index
    %c0_1 = arith.constant 0 : index
    %3 = vector.load %arg10[%c0, %c0_1] : memref<1x128xf32, #tpu.memory_space<vmem>>, vector<1x128xf32>
    %c0_2 = arith.constant 0 : index
    %c0_3 = arith.constant 0 : index
    %c0_4 = arith.constant 0 : index
    %4 = vector.load %arg2[%c0_2, %c0_3, %c0_4] : memref<1x256x128xf32, #tpu.memory_space<vmem>>, vector<1x256x128xf32>
    %5 = vector.shape_cast %4 : vector<1x256x128xf32> to vector<256x128xf32>
    %cst = arith.constant dense<0.000000e+00> : vector<128xf32>
    %6 = vector.multi_reduction <add>, %5, %cst [0] : vector<256x128xf32> to vector<128xf32>
    %7 = vector.shape_cast %6 : vector<128xf32> to vector<1x128xf32>
    %8 = arith.addf %3, %7 : vector<1x128xf32>
    %c0_5 = arith.constant 0 : index
    %c0_6 = arith.constant 0 : index
    %9 = vector.load %arg10[%c0_5, %c0_6] : memref<1x128xf32, #tpu.memory_space<vmem>>, vector<1x128xf32>
    tpu.vector_store %arg10[%c0_5, %c0_6], %8 {strides = array<i32>} : memref<1x128xf32, #tpu.memory_space<vmem>>, vector<1x128xf32>,
    %c0_i32_7 = arith.constant 0 : i32
    %10 = arith.cmpi eq, %arg1, %c0_i32_7 : i32
    %11 = arith.extui %10 : i1 to i32
    %c0_i32_8 = arith.constant 0 : i32
    %12 = arith.cmpi ne, %11, %c0_i32_8 : i32
    scf.if %12 {
      %c0_9 = arith.constant 0 : index
      %c0_10 = arith.constant 0 : index
      %13 = vector.load %arg10[%c0_9, %c0_10] : memref<1x128xf32, #tpu.memory_space<vmem>>, vector<1x128xf32>
      %cst_11 = arith.constant 3.906250e-03 : f32
      %14 = vector.broadcast %cst_11 : f32 to vector<1x128xf32>
      %15 = arith.mulf %13, %14 : vector<1x128xf32>
      %16 = arith.truncf %15 : vector<1x128xf32> to vector<1x128xbf16>
      %c0_12 = arith.constant 0 : index
      %c0_13 = arith.constant 0 : index
      %17 = vector.load %arg3[%c0_12, %c0_13] : memref<128x32xbf16, #tpu.memory_space<vmem>>, vector<128x32xbf16>
      %cst_14 = arith.constant dense<0.000000e+00> : vector<1x32xf32>
      %18 = tpu.matmul %16, %17, %cst_14 {dimension_numbers = #tpu.dot_dimension_numbers<[1], [0], [0], [1], [0, 0, 1, 1], [], []>} : vector<1x128xbf16>, vector<128x32xbf16>, vector<1x32xf32> -> vector<1x32xf32>
      %c0_15 = arith.constant 0 : index
      %c0_16 = arith.constant 0 : index
      %19 = vector.load %arg4[%c0_15, %c0_16] : memref<1x32xf32, #tpu.memory_space<vmem>>, vector<1x32xf32>
      %20 = arith.mulf %18, %19 : vector<1x32xf32>
      %c0_17 = arith.constant 0 : index
      %c0_18 = arith.constant 0 : index
      %21 = vector.load %arg5[%c0_17, %c0_18] : memref<1x32xf32, #tpu.memory_space<vmem>>, vector<1x32xf32>
      %22 = arith.addf %20, %21 : vector<1x32xf32>
      %cst_19 = arith.constant 0.000000e+00 : f32
      %23 = vector.broadcast %cst_19 : f32 to vector<1x32xf32>
      %24 = arith.maximumf %22, %23 : vector<1x32xf32>
      %25 = arith.truncf %24 : vector<1x32xf32> to vector<1x32xbf16>
      %c0_20 = arith.constant 0 : index
      %c0_21 = arith.constant 0 : index
      %26 = vector.load %arg6[%c0_20, %c0_21] : memref<32x128xbf16, #tpu.memory_space<vmem>>, vector<32x128xbf16>
      %cst_22 = arith.constant dense<0.000000e+00> : vector<1x128xf32>
      %27 = tpu.matmul %25, %26, %cst_22 {dimension_numbers = #tpu.dot_dimension_numbers<[1], [0], [0], [1], [0, 0, 1, 1], [], []>} : vector<1x32xbf16>, vector<32x128xbf16>, vector<1x128xf32> -> vector<1x128xf32>
      %c0_23 = arith.constant 0 : index
      %c0_24 = arith.constant 0 : index
      %28 = vector.load %arg7[%c0_23, %c0_24] : memref<1x128xf32, #tpu.memory_space<vmem>>, vector<1x128xf32>
      %29 = arith.mulf %27, %28 : vector<1x128xf32>
      %c0_25 = arith.constant 0 : index
      %c0_26 = arith.constant 0 : index
      %30 = vector.load %arg8[%c0_25, %c0_26] : memref<1x128xf32, #tpu.memory_space<vmem>>, vector<1x128xf32>
      %31 = arith.addf %29, %30 : vector<1x128xf32>
      %c0_27 = arith.constant 0 : index
      %c0_28 = arith.constant 0 : index
      %c0_29 = arith.constant 0 : index
      %32 = vector.load %arg9[%c0_27, %c0_28, %c0_29] : memref<1x1x128xf32, #tpu.memory_space<vmem>>, vector<1x1x128xf32>
      %33 = vector.shape_cast %32 : vector<1x1x128xf32> to vector<1x128xf32>
      %34 = vector.shape_cast %31 : vector<1x128xf32> to vector<1x1x128xf32>
      tpu.vector_store %arg9[%c0_27, %c0_28, %c0_29], %34 {strides = array<i32>} : memref<1x1x128xf32, #tpu.memory_space<vmem>>, vector<1x1x128xf32>,
    } else {
    }
    return
  }
  func.func @transform_0(%arg0: i32, %arg1: i32) -> (i32, i32, i32) {
    %c0_i32 = arith.constant 0 : i32
    %c0_i32_0 = arith.constant 0 : i32
    return %arg0, %arg1, %c0_i32 : i32, i32, i32
  }
  func.func @transform_1(%arg0: i32, %arg1: i32) -> (i32, i32) {
    %c0_i32 = arith.constant 0 : i32
    %c0_i32_0 = arith.constant 0 : i32
    %c0_i32_1 = arith.constant 0 : i32
    return %c0_i32, %c0_i32_0 : i32, i32
  }
  func.func @transform_2(%arg0: i32, %arg1: i32) -> (i32, i32) {
    %c0_i32 = arith.constant 0 : i32
    %c0_i32_0 = arith.constant 0 : i32
    %c0_i32_1 = arith.constant 0 : i32
    return %c0_i32, %c0_i32_0 : i32, i32
  }
  func.func @transform_3(%arg0: i32, %arg1: i32) -> (i32, i32) {
    %c0_i32 = arith.constant 0 : i32
    %c0_i32_0 = arith.constant 0 : i32
    %c0_i32_1 = arith.constant 0 : i32
    return %c0_i32, %c0_i32_0 : i32, i32
  }
  func.func @transform_4(%arg0: i32, %arg1: i32) -> (i32, i32) {
    %c0_i32 = arith.constant 0 : i32
    %c0_i32_0 = arith.constant 0 : i32
    %c0_i32_1 = arith.constant 0 : i32
    return %c0_i32, %c0_i32_0 : i32, i32
  }
  func.func @transform_5(%arg0: i32, %arg1: i32) -> (i32, i32) {
    %c0_i32 = arith.constant 0 : i32
    %c0_i32_0 = arith.constant 0 : i32
    %c0_i32_1 = arith.constant 0 : i32
    return %c0_i32, %c0_i32_0 : i32, i32
  }
  func.func @transform_6(%arg0: i32, %arg1: i32) -> (i32, i32) {
    %c0_i32 = arith.constant 0 : i32
    %c0_i32_0 = arith.constant 0 : i32
    %c0_i32_1 = arith.constant 0 : i32
    return %c0_i32, %c0_i32_0 : i32, i32
  }
  func.func @transform_7(%arg0: i32, %arg1: i32) -> (i32, i32, i32) {
    %c0_i32 = arith.constant 0 : i32
    %c0_i32_0 = arith.constant 0 : i32
    %c0_i32_1 = arith.constant 0 : i32
    return %arg0, %c0_i32, %c0_i32_0 : i32, i32, i32
  }
}

</mosaic_0001>

<bundles_post_ra>
// kernel: tpu_custom_call.1
= control target key start
LH: loop header
LB: loop body
LE: loop exit
PB: predicated region body
PF: predicated region fallthrough
CT: control target
= control target key end

     0   :  { %12 = vsyncpa [#allocation4], 0  ;;  %s1225_s0 = inlined_call_operand.hbm [shape: f32[2,256,128], index: 0, kind: input, shape index: {}]   ;;  %s1226_s1 = inlined_call_operand.vmem [shape: bf16[128,32], index: 1, kind: input, shape index: {}]   ;;  %s1227_s2 = inlined_call_operand.vmem [shape: f32[1,32], index: 2, kind: input, shape index: {}]   ;;  %s1228_s3 = inlined_call_operand.vmem [shape: f32[1,32], index: 3, kind: input, shape index: {}]   ;;  %s1229_s4 = inlined_call_operand.vmem [shape: bf16[32,128], index: 4, kind: input, shape index: {}]   ;;  %s1230_s5 = inlined_call_operand.vmem [shape: f32[1,128], index: 5, kind: input, shape index: {}]   ;;  %s1231_s6 = inlined_call_operand.vmem [shape: f32[1,128], index: 6, kind: input, shape index: {}]   ;;  %s1232_s7 = inlined_call_operand.hbm [shape: f32[2,1,128], index: 7, kind: output, shape index: {}]  }
   0x1   :  { %14 = vsyncpa [#allocation4 + $0x1], 0 }
   0x2   :  { %15 = vsyncpa [#allocation5], 0 }
   0x3   :  { %17 = vsyncpa [#allocation5 + $0x1], 0  ;;  %s962_s24 = smov 0   ;;  %s964_s25 = smov 0  }
   0x4   :  { %s966_s26 = smov 0   ;;  %s968_s27 = smov 0  }
   0x5   :  { %s970_s28 = smov 0   ;;  %s972_s29 = smov 0  }
   0x6 LB: > { %s662_s30 = sadd.s32 4294967295, %s914_s29   ;;  %s663_s8 = sadd.s32 4294967294, %s914_s29   ;;  %s914_s29 = sphi %s972_s29, %s23_s29   ;;  %s910_s28 = sphi %s970_s28, %s1247_s28   ;;  %s906_s27 = sphi %s968_s27, %s1246_s27   ;;  %s902_s26 = sphi %s966_s26, %s1245_s26   ;;  %s898_s25 = sphi %s964_s25, %s1244_s25   ;;  %s894_s24 = sphi %s962_s24, %s1243_s24  }
   0x7   : > { %s35_s9 = sadd.s32 1, %s910_s28  ;;  %s44_s10 = sadd.s32 1, %s902_s26 }
   0x8   : > { %p37_p0 = scmp.ge.s32.totalorder %s35_s9, 2  ;;  %p51_p1 = scmp.ne.s32.totalorder %s902_s26, %s898_s25 }
   0x9   : > { %p52_p2 = scmp.eq.s32.totalorder %s914_s29, 0  ;;  %p57_p3 = scmp.ne.s32.totalorder %s898_s25, %s894_s24 }
   0xa   : > { %s1249_s9 = smov (%p37_p0, %s35_s9), 0  ;;  %p58_p5 = scmp.eq.s32.totalorder %s662_s30, 0 }
   0xb   : > { %p1003_p4 = por %p52_p2, %p51_p1  ;;  %s39_s12 = ssub.s32 %s910_s28, %s1249_s9 }
   0xc   : > { %p207_p6 = scmp.eq.s32.totalorder %s662_s30, 1  ;;  %p42_p7 = scmp.eq.s32.totalorder %s39_s12, 0 }
   0xd   : > { %p1009_p8 = por %p58_p5, %p57_p3  ;;  %p213_p10 = scmp.eq.s32.totalorder %s663_s8, 1 }
   0xe   : > { %p1013_p9 = por %p207_p6, %p51_p1  ;;  %p738_p13 = scmp.lt.s32.totalorder %s914_s29, 2 }
   0xf   : > { %s1018_s15 = scalar_select %p42_p7, %s902_s26, %s44_s10  }
  0x10   : > { %s1236_s14 = scalar_select %p1013_p9, 1, 0 }
  0x11   : > { %p1020_p11 = por %p213_p10, %p57_p3  ;;  %s251_s17 = sand.u32 1, %s902_s26  }
  0x12   : > { %s666_s18 = sshll.u32 %s251_s17, 8  ;;  %s685_s19 = sshll.u32 %s910_s28, 12 }
  0x13   : > { %s1237_s16 = scalar_select %p1020_p11, 1, 0 }
  0x14   : > { %s1031_s22 = scalar_lea.hbm %s1225_s0, %s685_s19  ;;  %s255_s23 = scalar_lea.vmem [#allocation3], %s666_s18 }
  0x15   : > { %s264_s30 = sshll.u32 %s255_s23, 4  ;;  %p1037_p0 = pnand %p738_p13, %p1003_p4  ;;  %s1033_s30 = int_to_ptr.vmem [resolvable:$true] %s264_s30 }
  0x16   : > { %s1042_s10 = scalar_lea.sflag [#allocation4], %s251_s17  ;;  %s802_s12 = scalar_lea.hbm %s1031_s22, 4096 }
  0x17   : > { %p803_p2 = scmp.ne.s32.totalorder %s1031_s22, %s802_s12  ;;  %p804_p3 = pneg %p1037_p0 }
  0x18   : > { %s807_s11 = scalar_lea.hbm %s1225_s0, 8192  ;;  %p808_p4 = scmp.lt.u32.totalorder %s1031_s22, %s1225_s0 }
  0x19   : > { %p805_p5 = pnand %p804_p3, %p803_p2  ;;  %p809_p7 = scmp.lt.u32.totalorder %s807_s11, %s802_s12 }
  0x1a   : > { %p811_p13 = scmp.lt.u32.totalorder %s802_s12, %s1031_s22 }
  0x1b   : > { %p806_p6 = pneg %p805_p5  ;;  %p810_p10 = por %p809_p7, %p808_p4 }
  0x1d   : > { %p812_p12 = por %p811_p13, %p810_p10 }
  0x1f   : > { %p813_p1 = pnand %p812_p12, %p806_p6 }
  0x21   : > { %816 = shalt.err (!%p813_p1)
}
  0x22   : > { %s817_s17 = scalar_lea.vmem %s1033_s30, 4096  ;;  %s916_s23 = smov [#allocation3]  }
  0x23   : > { %p818_p2 = scmp.ne.s32.totalorder %s1033_s30, %s817_s17  ;;  %s822_s18 = sshll.u32 %s916_s23, 4  ;;  %s823_s18 = int_to_ptr.vmem [resolvable:$false] %s822_s18 }
  0x24   : > { %s824_s19 = scalar_lea.vmem %s823_s18, 8192  ;;  %p825_p9 = scmp.lt.s32.totalorder %s1033_s30, %s823_s18 }
  0x25   : > { %p820_p5 = pnand %p818_p2, %p804_p3  ;;  %p826_p4 = scmp.lt.s32.totalorder %s824_s19, %s817_s17 }
  0x27   : > { %p821_p11 = pneg %p820_p5  ;;  %p827_p7 = por %p826_p4, %p825_p9 }
  0x29   : > { %p828_p10 = pnand %p827_p7, %p821_p11 }
  0x2b   : > { %831 = shalt.err (!%p828_p10)
}
  0x2c   : > { %s917_s12 = smov 128   ;;  %s918_s11 = smov 8  }
  0x2d   : > { %733 = dma.hbm_to_vmem [thread:$0]  (!%p1037_p0), %s1031_s22, 4096, %s1033_s30, %s1042_s10, %s917_s12, %s917_s12, %s918_s11  }
  0x2e   : > { %p272_p12 = scmp.lt.s32.totalorder %s914_s29, 3  ;;  %p1239_p1 = scmp.ge.s32.totalorder %s914_s29, 1 }
  0x30   : > { %p273_p3 = pnand %p1239_p1, %p272_p12 }
  0x31   : > { %s1074_s20 = sand.u32 (!%p273_p3), 1, %s898_s25  }
  0x32   : > { %276 = sbr.rel (%p273_p3) target bundleno = 599 (0x257), region = 48  ;;  %s670_s21 = sshll.u32 (!%p273_p3), %s1074_s20, 8 }
  0x33   : > { %s279_s17 = scalar_lea.sflag (!%p273_p3), [#allocation4], %s1074_s20  ;;  %s1078_s23 = scalar_lea.vmem (!%p273_p3), [#allocation3], %s670_s21 }
  0x39   : > { %885 = dma.done.wait (%p1009_p8), %s279_s17, 4096  }
  0x3a   : > { %887 = vsyncadd (%p1009_p8), %s279_s17, 4294963200  ;;  %v919_v0 = vmov 0.0   ;;  %vm920_vm0 = vmmov 0   ;;  %v792_v1 = vld [vmem:[%s1226_s1] sm:$0xff]   ;;  %v793_v2 = vld [vmem:[%s1226_s1 + $0x8] sm:$0xff]   ;;  %vm523_vm1 = vcmask 261120  }
  0x3b   : > { %698 = vmatprep.subr.bf16.mxu0 %v919_v0  ;;  %318 = vst [vmem:[#allocation2] sm:$0x1] %v919_v0  ;;  %714 = vmatprep.mubr.msk.bf16.mxu0 %vm920_vm0, %v919_v0  ;;  %v794_v3 = vld [vmem:[%s1226_s1 + $0x10] sm:$0xff]   ;;  %v320_v4 = vld [vmem:[%s1078_s23] sm:$0xff]  ;;  %v795_v8 = vld [vmem:[%s1226_s1 + $0x18] sm:$0xff]   ;;  %s682_s18 = sshll.u32 %s906_s27, 4 }
  0x3c   : > { %718 = vmatprep.subr.bf16.mxu1 %v919_v0  ;;  %722 = vmatprep.mubr.msk.bf16.mxu1 %vm920_vm0, %v919_v0  ;;  %v321_v5 = vld [vmem:[%s1078_s23 + $0x8] sm:$0xff]  ;;  %v322_v6 = vld [vmem:[%s1078_s23 + $0x10] sm:$0xff]  ;;  %v323_v9 = vld [vmem:[%s1078_s23 + $0x18] sm:$0xff]  ;;  %s311_s19 = scalar_lea.vmem [#allocation6], %s1074_s20  ;;  %s1176_s21 = scalar_lea.hbm %s1232_s7, %s682_s18 }
  0x3d   : > { %699 = vmatpush3.bf16.msra.mxu0 %v792_v1  ;;  %v352_v7 = vadd.f32 %v321_v5, %v320_v4  ;;  %v324_v11 = vld [vmem:[%s1078_s23 + $0x20] sm:$0xff]  ;;  %v325_v14 = vld [vmem:[%s1078_s23 + $0x28] sm:$0xff]  ;;  %v326_v16 = vld [vmem:[%s1078_s23 + $0x30] sm:$0xff]  ;;  %s573_s17 = scalar_lea.sflag [#allocation5], %s1074_s20  ;;  %p1240_p9 = scmp.ne.s32.totalorder %s1236_s14, 0 }
  0x3e   : > { %700 = vmatprep.subr.bf16.mxu0 %v919_v0  ;;  %v796_v13 = vld [vmem:[%s1226_s1 + $0x20] sm:$0xff]   ;;  %v797_v18 = vld [vmem:[%s1226_s1 + $0x28] sm:$0xff]   ;;  %v798_v23 = vld [vmem:[%s1226_s1 + $0x30] sm:$0xff]   ;;  %s921_s22 = smov [#allocation6]  }
  0x3f   : > { %v353_v10 = vadd.f32 %v352_v7, %v322_v6  ;;  %v327_v19 = vld [vmem:[%s1078_s23 + $0x38] sm:$0xff]  ;;  %v328_v21 = vld [vmem:[%s1078_s23 + $0x40] sm:$0xff]  ;;  %v329_v24 = vld [vmem:[%s1078_s23 + $0x48] sm:$0xff]  ;;  %s836_s30 = sshll.u32 %s921_s22, 4  ;;  %s837_s30 = int_to_ptr.vmem [resolvable:$false] %s836_s30 }
  0x40   : > { %v330_v26 = vld [vmem:[%s1078_s23 + $0x50] sm:$0xff]  ;;  %v331_v29 = vld [vmem:[%s1078_s23 + $0x58] sm:$0xff]  ;;  %v332_v31 = vld [vmem:[%s1078_s23 + $0x60] sm:$0xff]  ;;  %s838_s13 = scalar_lea.vmem %s837_s30, 32 }
  0x41   : > { %701 = vmatpush3.bf16.msra.mxu0 %v793_v2  ;;  %v354_v12 = vadd.f32 %v353_v10, %v323_v9  ;;  %v799_v28 = vld [vmem:[%s1226_s1 + $0x38] sm:$0xff]   ;;  %v333_v33 = vld [vmem:[%s1078_s23 + $0x68] sm:$0xff]  ;;  %v336_v39 = vld [vmem:[%s1078_s23 + $0x80] sm:$0xff] }
  0x42   : > { %702 = vmatprep.subr.bf16.mxu0 %v919_v0  ;;  %v334_v35 = vld [vmem:[%s1078_s23 + $0x70] sm:$0xff]  ;;  %v335_v37 = vld [vmem:[%s1078_s23 + $0x78] sm:$0xff]  ;;  %v337_v41 = vld [vmem:[%s1078_s23 + $0x88] sm:$0xff] }
  0x43   : > { %v355_v15 = vadd.f32 %v354_v12, %v324_v11  ;;  %v338_v43 = vld [vmem:[%s1078_s23 + $0x90] sm:$0xff]  ;;  %v339_v45 = vld [vmem:[%s1078_s23 + $0x98] sm:$0xff]  ;;  %v340_v47 = vld [vmem:[%s1078_s23 + $0xa0] sm:$0xff] }
  0x44   : > { %v341_v49 = vld [vmem:[%s1078_s23 + $0xa8] sm:$0xff]  ;;  %v342_v51 = vld [vmem:[%s1078_s23 + $0xb0] sm:$0xff]  ;;  %v343_v53 = vld [vmem:[%s1078_s23 + $0xb8] sm:$0xff] }
  0x45   : > { %703 = vmatpush3.bf16.msra.mxu0 %v794_v3  ;;  %v356_v17 = vadd.f32 %v355_v15, %v325_v14  ;;  %v344_v55 = vld [vmem:[%s1078_s23 + $0xc0] sm:$0xff]  ;;  %v345_v57 = vld [vmem:[%s1078_s23 + $0xc8] sm:$0xff]  ;;  %v346_v59 = vld [vmem:[%s1078_s23 + $0xd0] sm:$0xff] }
  0x46   : > { %704 = vmatprep.subr.bf16.mxu0 %v919_v0  ;;  %v347_v61 = vld [vmem:[%s1078_s23 + $0xd8] sm:$0xff]  ;;  %v348_v63 = vld [vmem:[%s1078_s23 + $0xe0] sm:$0xff]  ;;  %v349_v2 = vld [vmem:[%s1078_s23 + $0xe8] sm:$0xff] }
  0x47   : > { %v357_v20 = vadd.f32 %v356_v17, %v326_v16  ;;  %v350_v4 = vld [vmem:[%s1078_s23 + $0xf0] sm:$0xff]  ;;  %v351_v6 = vld [vmem:[%s1078_s23 + $0xf8] sm:$0xff]  ;;  %s585_s23 = sshll.u32 %s311_s19, 4  ;;  %s1178_s23 = int_to_ptr.vmem [resolvable:$true] %s585_s23 }
  0x48   : > { %v319_v14 = vld [vmem:[#allocation2] sm:$0x1]  ;;  %s832_s27 = scalar_lea.vmem %s1178_s23, 16  ;;  %p839_p6 = scmp.lt.s32.totalorder %s1178_s23, %s837_s30 }
  0x49   : > { %705 = vmatpush3.bf16.msra.mxu0 %v795_v8  ;;  %v358_v22 = vadd.f32 %v357_v20, %v327_v19  ;;  %v800_v20 = vld [vmem:[%s1229_s4] sm:$0xff]   ;;  %p833_p8 = scmp.ne.s32.totalorder %s1178_s23, %s832_s27  ;;  %p840_p13 = scmp.lt.s32.totalorder %s838_s13, %s832_s27 }
  0x4a   : > { %706 = vmatprep.subr.bf16.mxu0 %v919_v0  ;;  %719 = vmatpush3.bf16.msra.mxu1 %v800_v20 }
  0x4b   : > { %v359_v25 = vadd.f32 %v358_v22, %v328_v21  ;;  %720 = vmatprep.subr.bf16.mxu1 %v919_v0  ;;  %v801_v21 = vld [vmem:[%s1229_s4 + $0x8] sm:$0xff]   ;;  %v501_v22 = vld [vmem:[%s1227_s2] sm:$0x1]  ;;  %p834_p11 = pnand %p833_p8, %p1240_p9  ;;  %p841_p2 = por %p840_p13, %p839_p6 }
  0x4d   : > { %707 = vmatpush3.bf16.msra.mxu0 %v796_v13  ;;  %v360_v27 = vadd.f32 %v359_v25, %v329_v24  ;;  %v503_v24 = vld [vmem:[%s1228_s3] sm:$0x1]  ;;  %p835_p0 = pneg %p834_p11 }
  0x4e   : > { %708 = vmatprep.subr.bf16.mxu0 %v919_v0  ;;  %721 = vmatpush3.bf16.msra.mxu1 %v801_v21 }
  0x4f   : > { %v361_v30 = vadd.f32 %v360_v27, %v330_v26  ;;  %p842_p5 = pnand %p841_p2, %p835_p0 }
  0x51   : > { %709 = vmatpush3.bf16.msra.mxu0 %v797_v18  ;;  %v362_v32 = vadd.f32 %v361_v30, %v331_v29 }
  0x52   : > { %710 = vmatprep.subr.bf16.mxu0 %v919_v0 }
  0x53   : > { %v363_v34 = vadd.f32 %v362_v32, %v332_v31  ;;  %v567_v31 = vld [vmem:[%s1230_s5] sm:$0x1] }
  0x55   : > { %711 = vmatpush3.bf16.msra.mxu0 %v798_v23  ;;  %v364_v36 = vadd.f32 %v363_v34, %v333_v33  ;;  %v569_v33 = vld [vmem:[%s1231_s6] sm:$0x1] }
  0x56   : > { %712 = vmatprep.subr.bf16.mxu0 %v919_v0 }
  0x57   : > { %v365_v38 = vadd.f32 %v364_v36, %v334_v35 }
  0x59   : > { %713 = vmatpush3.bf16.msra.mxu0 %v799_v28  ;;  %v366_v40 = vadd.f32 %v365_v38, %v335_v37 }
  0x5b   : > { %v367_v42 = vadd.f32 %v366_v40, %v336_v39 }
  0x5d   : > { %v368_v44 = vadd.f32 %v367_v42, %v337_v41 }
  0x5f   : > { %v369_v46 = vadd.f32 %v368_v44, %v338_v43 }
  0x61   : > { %v370_v48 = vadd.f32 %v369_v46, %v339_v45 }
  0x63   : > { %v371_v50 = vadd.f32 %v370_v48, %v340_v47 }
  0x65   : > { %v372_v52 = vadd.f32 %v371_v50, %v341_v49 }
  0x67   : > { %v373_v54 = vadd.f32 %v372_v52, %v342_v51 }
  0x69   : > { %v374_v56 = vadd.f32 %v373_v54, %v343_v53 }
  0x6b   : > { %v375_v58 = vadd.f32 %v374_v56, %v344_v55 }
  0x6d   : > { %v376_v60 = vadd.f32 %v375_v58, %v345_v57 }
  0x6f   : > { %v377_v62 = vadd.f32 %v376_v60, %v346_v59 }
  0x71   : > { %v378_v1 = vadd.f32 %v377_v62, %v347_v61 }
  0x73   : > { %v379_v3 = vadd.f32 %v378_v1, %v348_v63 }
  0x75   : > { %v380_v5 = vadd.f32 %v379_v3, %v349_v2 }
  0x77   : > { %v381_v7 = vadd.f32 %v380_v5, %v350_v4 }
  0x79   : > { %v382_v8 = vadd.f32 %v381_v7, %v351_v6 }
  0x7b   : > { %v383_v9 = vrot.slane %v382_v8, 4 }
  0x7d   : > { %v384_v10 = vadd.f32 %v383_v9, %v382_v8 }
  0x7f   : > { %v385_v11 = vrot.slane %v384_v10, 2 }
  0x81   : > { %v386_v12 = vadd.f32 %v385_v11, %v384_v10 }
  0x83   : > { %v387_v13 = vrot.slane %v386_v12, 1 }
  0x85   : > { %v388_v15 = vadd.f32 %v387_v13, %v386_v12 }
  0x87   : > { %v389_v16 = vadd.f32 %v388_v15, %v319_v14 }
  0x89   : > { %390 = vst [vmem:[#allocation2] sm:$0x1] %v389_v16 }
  0x90   : > { %v394_v17 = vld [vmem:[#allocation2] sm:$0x1] }
  0x91   : > { %v395_v18 = vmul.f32 0.00390625, %v394_v17 }
  0x93   : > { %v396_v19 = vpack.c.bf16 %v395_v18, %v395_v18 }
  0x95   : > { %715 = vmatmul.mubr.bf16.vlgmr.msra.gmra.mrb[0].mxu0 %v396_v19 }
 0x168   : > { %v495_v23 = vpop.f32.mrb[0].mxu0 }
 0x169   : > { %v502_v25 = vmul.f32 %v501_v22, %v495_v23  ;;  %v716_v26 = vpop.f32.mrb[1].mxu0 }
 0x16a   : > { %v498_v27 = vpop.f32.mrb[2].mxu0 }
 0x16b   : > { %v504_v0 = vadd.f32 %v503_v24, %v502_v25  ;;  %v717_v28 = vpop.f32.mrb[3].mxu0 }
 0x16d   : > { %v505_v29 = vmax.f32 %v504_v0, 0.0 }
 0x16f   : > { %v506_v30 = vpack.c.bf16 %v505_v29, %v505_v29 }
 0x171   : > { %723 = vmatmul.mubr.msk.bf16.vlgmr.msra.gmra.mrb[0].mxu1 %vm523_vm1, %v506_v30 }
 0x244   : > { %v561_v32 = vpop.f32.mrb[0].mxu1 }
 0x245   : > { %v568_v34 = vmul.f32 %v567_v31, %v561_v32  ;;  %v724_v35 = vpop.f32.mrb[1].mxu1 }
 0x246   : > { %v564_v36 = vpop.f32.mrb[2].mxu1 }
 0x247   : > { %v570_v37 = vadd.f32 %v569_v33, %v568_v34  ;;  %v725_v38 = vpop.f32.mrb[3].mxu1 }
 0x249   : > { %571 = vst [vmem:[%s311_s19] sm:$0x1] %v570_v37 }
 0x24a   : > { %845 = shalt.err (!%p842_p5)
}
 0x24b   : > { %s846_s20 = scalar_lea.hbm %s1176_s21, 16  ;;  %s850_s18 = scalar_lea.hbm %s1232_s7, 32 }
 0x24c   : > { %p847_p4 = scmp.ne.s32.totalorder %s1176_s21, %s846_s20  ;;  %p851_p12 = scmp.lt.u32.totalorder %s1176_s21, %s1232_s7 }
 0x24d   : > { %p852_p1 = scmp.lt.u32.totalorder %s850_s18, %s846_s20  ;;  %p854_p8 = scmp.lt.u32.totalorder %s846_s20, %s1176_s21 }
 0x24e   : > { %p848_p7 = pnand %p847_p4, %p1240_p9 }
 0x24f   : > { %p853_p3 = por %p852_p1, %p851_p12 }
 0x250   : > { %p849_p10 = pneg %p848_p7 }
 0x251   : > { %p855_p11 = por %p854_p8, %p853_p3 }
 0x253   : > { %p856_p0 = pnand %p855_p11, %p849_p10 }
 0x255   : > { %859 = shalt.err (!%p856_p0)
}
 0x256   : > { %728 = dma.vmem_to_hbm [thread:$0]  (%p1240_p9), %s1178_s23, 16, %s1176_s21, %s573_s17  }
 0x257 PF: > { %s597_s11 = sand.u32 1, %s894_s24   ;;  %p1241_p6 = scmp.ne.s32.totalorder %s1237_s16, 0 }
 0x258   : > { %p1242_p13 = scmp.ge.s32.totalorder %s914_s29, 2  ;;  %s598_s27 = scalar_lea.sflag [#allocation5], %s597_s11 }
 0x25a   : > { %p735_p2 = pnand %p1242_p13, %p1241_p6 }
 0x25c   : > { %889 = dma.done.wait (!%p735_p2), %s598_s27, 16  }
 0x25d   : > { %891 = vsyncadd (!%p735_p2), %s598_s27, 4294967280  ;;  %s23_s29 = sadd.s32 1, %s914_s29   ;;  %s1243_s24 = smov %s898_s25 }
 0x25e   : > { %p20_p5 = scmp.ge.s32.totalorder %s23_s29, 4   ;;  %s1244_s25 = smov %s902_s26 }
 0x25f   : > { %s1245_s26 = smov %s1018_s15  ;;  %s1246_s27 = smov %s910_s28 }
 0x260   : > { %s1247_s28 = smov %s1249_s9  ;;  %22 = sbr.rel (!%p20_p5) target bundleno = 6 (0x6), region = 101 }
 0x267   :  { %602 = vsyncpa [#allocation4], 1 }
 0x268   :  { %604 = vsyncpa [#allocation4 + $0x1], 1 }
 0x269   :  { %605 = vsyncpa [#allocation5], 1 }
 0x26a   :  { %607 = vsyncpa [#allocation5 + $0x1], 1 }

</bundles_post_ra>
